<compile_context>
chip_gen: v7x
topology: tpu7x:2x2x1
jax: 0.10.0
libtpu: 0.0.40
codegen_flags: <defaults>
</compile_context>

<pallas_src>
import functools

import jax
import jax.numpy as jnp
from jax.experimental import pallas as pl
from jax.experimental.pallas import tpu as pltpu


def actor_kernel(state_ref, w1_ref, b1_ref, w2_ref, b2_ref,
                 wh_ref, bh_ref, out_ref, *, action_dim):
    # state : (bt, S)
    # w1    : (S, H),   b1 : (1, H)
    # w2    : (H, H),   b2 : (1, H)
    # wh    : (H, 2A),  bh : (1, 2A)   -> fused [mean | log_std] heads
    x = state_ref[...]

    h1 = jnp.dot(x, w1_ref[...], preferred_element_type=jnp.float32) + b1_ref[...]
    h1 = jnp.maximum(h1, 0.0)

    h2 = jnp.dot(h1, w2_ref[...], preferred_element_type=jnp.float32) + b2_ref[...]
    h2 = jnp.maximum(h2, 0.0)

    heads = jnp.dot(h2, wh_ref[...], preferred_element_type=jnp.float32) + bh_ref[...]

    # Clamp only the log_std half (lanes >= action_dim); mean lanes pass through.
    lane = jax.lax.broadcasted_iota(jnp.int32, heads.shape, dimension=1)
    clamped = jnp.clip(heads, -20.0, 2.0)
    out_ref[...] = jnp.where(lane >= action_dim, clamped, heads).astype(out_ref.dtype)


def actor_forward(state, params, *, block_b=8192):
    """state: (B, state_dim) -> (mean, log_std), each (B, action_dim)."""
    w1, b1, w2, b2, wm, bm, wl, bl = params
    B, S = state.shape
    H = w1.shape[1]
    A = wm.shape[1]

    # One-time wrapper-side head fusion and 2-D bias rows.
    wh = jnp.concatenate([wm, wl], axis=1)              # (H, 2A)
    bh = jnp.concatenate([bm, bl]).reshape(1, 2 * A)     # (1, 2A)
    b1r = b1.reshape(1, H)
    b2r = b2.reshape(1, H)

    def rup8(n):
        return max(8, (n + 7) // 8 * 8)

    # Batch tile: sublane-aligned, as large as block_b allows; capped at
    # ceil(B/2) when B >= 16 so the grid has >= 2 steps (v7x megacore).
    bt = min(block_b, rup8(B))
    if B >= 16:
        bt = min(bt, rup8(pl.cdiv(B, 2)))
    bt = rup8(bt)
    n_tiles = pl.cdiv(B, bt)
    # Ragged last tile (when bt does not divide B) is handled by Pallas via
    # masked stores — no wrapper-side jnp.pad / extra HBM round trip.

    flops = 2 * B * (S * H + H * H + H * 2 * A)
    bytes_accessed = 4 * (B * S + B * 2 * A + S * H + H * H + H * 2 * A + 2 * H + 2 * A)
    cost = pl.CostEstimate(flops=flops, transcendentals=0,
                           bytes_accessed=bytes_accessed)

    const = lambda i: (0, 0)

    packed = pl.pallas_call(
        functools.partial(actor_kernel, action_dim=A),
        out_shape=jax.ShapeDtypeStruct((B, 2 * A), jnp.float32),
        grid=(n_tiles,),
        in_specs=[
            pl.BlockSpec((bt, S), lambda i: (i, 0)),     # state tile (streamed)
            pl.BlockSpec((S, H), const),                 # w1 (VMEM-resident)
            pl.BlockSpec((1, H), const),                 # b1
            pl.BlockSpec((H, H), const),                 # w2
            pl.BlockSpec((1, H), const),                 # b2
            pl.BlockSpec((H, 2 * A), const),             # fused head weights
            pl.BlockSpec((1, 2 * A), const),             # fused head bias
        ],
        out_specs=pl.BlockSpec((bt, 2 * A), lambda i: (i, 0)),
        compiler_params=pltpu.CompilerParams(
            dimension_semantics=("parallel",)),
        cost_estimate=cost,
    )(state, w1, b1r, w2, b2r, wh, bh)

    # Static wrapper-side split of the packed [mean | log_std] output.
    return packed[:, :A], packed[:, A:]


def init_actor_params(key, state_dim, action_dim, hidden_dim):
    """Deterministic init matching nn.Linear default (uniform +/- 1/sqrt(fan_in))."""
    def linear_init(k, fan_in, fan_out):
        kw, kb = jax.random.split(k)
        bound = 1.0 / jnp.sqrt(fan_in)
        # stored as (in, out) so the kernel computes x @ W
        w = jax.random.uniform(kw, (fan_in, fan_out), jnp.float32, -bound, bound)
        b = jax.random.uniform(kb, (fan_out,), jnp.float32, -bound, bound)
        return w, b

    k1, k2, k3, k4 = jax.random.split(key, 4)
    w1, b1 = linear_init(k1, state_dim, hidden_dim)
    w2, b2 = linear_init(k2, hidden_dim, hidden_dim)
    wm, bm = linear_init(k3, hidden_dim, action_dim)
    wl, bl = linear_init(k4, hidden_dim, action_dim)
    return (w1, b1, w2, b2, wm, bm, wl, bl)


def _reference(state, params):
    w1, b1, w2, b2, wm, bm, wl, bl = params
    h1 = jnp.maximum(state @ w1 + b1, 0.0)
    h2 = jnp.maximum(h1 @ w2 + b2, 0.0)
    mean = h2 @ wm + bm
    log_std = jnp.clip(h2 @ wl + bl, -20.0, 2.0)
    return mean, log_std


if __name__ == "__main__":
    STATE_DIM, ACTION_DIM, HIDDEN_DIM = 16, 8, 32

    key = jax.random.PRNGKey(0)
    kp, ks1, ks2 = jax.random.split(key, 3)
    params = init_actor_params(kp, STATE_DIM, ACTION_DIM, HIDDEN_DIM)

    # Case 1: small batch, single grid step.
    B1 = 8
    state1 = jax.random.normal(ks1, (B1, STATE_DIM), jnp.float32)
    mean1, logstd1 = actor_forward(state1, params)
    jax.block_until_ready((mean1, logstd1))

    mref1, lref1 = _reference(state1, params)
    assert mean1.shape == (B1, ACTION_DIM)
    assert logstd1.shape == (B1, ACTION_DIM)
    assert jnp.allclose(mean1, mref1, atol=1e-5), "mean mismatch vs reference (B=8)"
    assert jnp.allclose(logstd1, lref1, atol=1e-5), "log_std mismatch vs reference (B=8)"

    # Case 2: batch that splits into 2 grid steps with a ragged last tile.
    B2 = 50
    state2 = jax.random.normal(ks2, (B2, STATE_DIM), jnp.float32)
    mean2, logstd2 = actor_forward(state2, params)
    jax.block_until_ready((mean2, logstd2))

    mref2, lref2 = _reference(state2, params)
    assert jnp.allclose(mean2, mref2, atol=1e-5), "mean mismatch vs reference (B=50)"
    assert jnp.allclose(logstd2, lref2, atol=1e-5), "log_std mismatch vs reference (B=50)"

    print("KERNEL_OK")
</pallas_src>

<mosaic_0001>
module attributes {stable_mosaic.version = 11 : i64} {
  func.func @actor_kernel(%arg0: i32, %arg1: memref<8x16xf32, #tpu.memory_space<vmem>>, %arg2: memref<16x32xf32, #tpu.memory_space<vmem>>, %arg3: memref<1x32xf32, #tpu.memory_space<vmem>>, %arg4: memref<32x32xf32, #tpu.memory_space<vmem>>, %arg5: memref<1x32xf32, #tpu.memory_space<vmem>>, %arg6: memref<32x16xf32, #tpu.memory_space<vmem>>, %arg7: memref<1x16xf32, #tpu.memory_space<vmem>>, %arg8: memref<8x16xf32, #tpu.memory_space<vmem>>) attributes {dimension_semantics = [#tpu.dimension_semantics<parallel>], iteration_bounds = array<i64: 1>, scalar_prefetch = 0 : i64, scratch_operands = 0 : i64, tpu.core_type = #tpu.core_type<tc>, window_params = [{transform_indices = @transform_0, window_bounds = array<i64: 8, 16>}, {pipeline_mode = #tpu.pipeline_mode<synchronous>, transform_indices = @transform_1, window_bounds = array<i64: 16, 32>}, {pipeline_mode = #tpu.pipeline_mode<synchronous>, transform_indices = @transform_2, window_bounds = array<i64: 1, 32>}, {pipeline_mode = #tpu.pipeline_mode<synchronous>, transform_indices = @transform_3, window_bounds = array<i64: 32, 32>}, {pipeline_mode = #tpu.pipeline_mode<synchronous>, transform_indices = @transform_4, window_bounds = array<i64: 1, 32>}, {pipeline_mode = #tpu.pipeline_mode<synchronous>, transform_indices = @transform_5, window_bounds = array<i64: 32, 16>}, {pipeline_mode = #tpu.pipeline_mode<synchronous>, transform_indices = @transform_6, window_bounds = array<i64: 1, 16>}, {transform_indices = @transform_7, window_bounds = array<i64: 8, 16>}]} {
    %c0 = arith.constant 0 : index
    %c0_0 = arith.constant 0 : index
    %0 = vector.load %arg1[%c0, %c0_0] : memref<8x16xf32, #tpu.memory_space<vmem>>, vector<8x16xf32>
    %c0_1 = arith.constant 0 : index
    %c0_2 = arith.constant 0 : index
    %1 = vector.load %arg2[%c0_1, %c0_2] : memref<16x32xf32, #tpu.memory_space<vmem>>, vector<16x32xf32>
    %cst = arith.constant dense<0.000000e+00> : vector<8x32xf32>
    %2 = tpu.matmul %0, %1, %cst {dimension_numbers = #tpu.dot_dimension_numbers<[1], [0], [0], [1], [0, 0, 1, 1], [], []>} : vector<8x16xf32>, vector<16x32xf32>, vector<8x32xf32> -> vector<8x32xf32>
    %c0_3 = arith.constant 0 : index
    %c0_4 = arith.constant 0 : index
    %3 = vector.load %arg3[%c0_3, %c0_4] : memref<1x32xf32, #tpu.memory_space<vmem>>, vector<1x32xf32>
    %4 = vector.broadcast %3 : vector<1x32xf32> to vector<8x32xf32>
    %5 = arith.addf %2, %4 : vector<8x32xf32>
    %cst_5 = arith.constant 0.000000e+00 : f32
    %6 = vector.broadcast %cst_5 : f32 to vector<8x32xf32>
    %7 = arith.maximumf %5, %6 : vector<8x32xf32>
    %c0_6 = arith.constant 0 : index
    %c0_7 = arith.constant 0 : index
    %8 = vector.load %arg4[%c0_6, %c0_7] : memref<32x32xf32, #tpu.memory_space<vmem>>, vector<32x32xf32>
    %cst_8 = arith.constant dense<0.000000e+00> : vector<8x32xf32>
    %9 = tpu.matmul %7, %8, %cst_8 {dimension_numbers = #tpu.dot_dimension_numbers<[1], [0], [0], [1], [0, 0, 1, 1], [], []>} : vector<8x32xf32>, vector<32x32xf32>, vector<8x32xf32> -> vector<8x32xf32>
    %c0_9 = arith.constant 0 : index
    %c0_10 = arith.constant 0 : index
    %10 = vector.load %arg5[%c0_9, %c0_10] : memref<1x32xf32, #tpu.memory_space<vmem>>, vector<1x32xf32>
    %11 = vector.broadcast %10 : vector<1x32xf32> to vector<8x32xf32>
    %12 = arith.addf %9, %11 : vector<8x32xf32>
    %cst_11 = arith.constant 0.000000e+00 : f32
    %13 = vector.broadcast %cst_11 : f32 to vector<8x32xf32>
    %14 = arith.maximumf %12, %13 : vector<8x32xf32>
    %c0_12 = arith.constant 0 : index
    %c0_13 = arith.constant 0 : index
    %15 = vector.load %arg6[%c0_12, %c0_13] : memref<32x16xf32, #tpu.memory_space<vmem>>, vector<32x16xf32>
    %cst_14 = arith.constant dense<0.000000e+00> : vector<8x16xf32>
    %16 = tpu.matmul %14, %15, %cst_14 {dimension_numbers = #tpu.dot_dimension_numbers<[1], [0], [0], [1], [0, 0, 1, 1], [], []>} : vector<8x32xf32>, vector<32x16xf32>, vector<8x16xf32> -> vector<8x16xf32>
    %c0_15 = arith.constant 0 : index
    %c0_16 = arith.constant 0 : index
    %17 = vector.load %arg7[%c0_15, %c0_16] : memref<1x16xf32, #tpu.memory_space<vmem>>, vector<1x16xf32>
    %18 = vector.broadcast %17 : vector<1x16xf32> to vector<8x16xf32>
    %19 = arith.addf %16, %18 : vector<8x16xf32>
    %20 = tpu.iota {dimensions = array<i32: 1>} : vector<8x16xi32>
    %cst_17 = arith.constant -2.000000e+01 : f32
    %cst_18 = arith.constant 2.000000e+00 : f32
    %21 = vector.broadcast %cst_17 : f32 to vector<8x16xf32>
    %22 = arith.maximumf %21, %19 : vector<8x16xf32>
    %23 = vector.broadcast %cst_18 : f32 to vector<8x16xf32>
    %24 = arith.minimumf %23, %22 : vector<8x16xf32>
    %c8_i32 = arith.constant 8 : i32
    %25 = vector.broadcast %c8_i32 : i32 to vector<8x16xi32>
    %26 = arith.cmpi sge, %20, %25 : vector<8x16xi32>
    %27 = arith.select %26, %24, %19 : vector<8x16xi1>, vector<8x16xf32>
    %c0_19 = arith.constant 0 : index
    %c0_20 = arith.constant 0 : index
    %28 = vector.load %arg8[%c0_19, %c0_20] : memref<8x16xf32, #tpu.memory_space<vmem>>, vector<8x16xf32>
    tpu.vector_store %arg8[%c0_19, %c0_20], %27 {strides = array<i32>} : memref<8x16xf32, #tpu.memory_space<vmem>>, vector<8x16xf32>,
    return
  }
  func.func @transform_0(%arg0: i32) -> (i32, i32) {
    %c0_i32 = arith.constant 0 : i32
    %c0_i32_0 = arith.constant 0 : i32
    return %arg0, %c0_i32 : i32, i32
  }
  func.func @transform_1(%arg0: i32) -> (i32, i32) {
    %c0_i32 = arith.constant 0 : i32
    %c0_i32_0 = arith.constant 0 : i32
    %c0_i32_1 = arith.constant 0 : i32
    return %c0_i32, %c0_i32_0 : i32, i32
  }
  func.func @transform_2(%arg0: i32) -> (i32, i32) {
    %c0_i32 = arith.constant 0 : i32
    %c0_i32_0 = arith.constant 0 : i32
    %c0_i32_1 = arith.constant 0 : i32
    return %c0_i32, %c0_i32_0 : i32, i32
  }
  func.func @transform_3(%arg0: i32) -> (i32, i32) {
    %c0_i32 = arith.constant 0 : i32
    %c0_i32_0 = arith.constant 0 : i32
    %c0_i32_1 = arith.constant 0 : i32
    return %c0_i32, %c0_i32_0 : i32, i32
  }
  func.func @transform_4(%arg0: i32) -> (i32, i32) {
    %c0_i32 = arith.constant 0 : i32
    %c0_i32_0 = arith.constant 0 : i32
    %c0_i32_1 = arith.constant 0 : i32
    return %c0_i32, %c0_i32_0 : i32, i32
  }
  func.func @transform_5(%arg0: i32) -> (i32, i32) {
    %c0_i32 = arith.constant 0 : i32
    %c0_i32_0 = arith.constant 0 : i32
    %c0_i32_1 = arith.constant 0 : i32
    return %c0_i32, %c0_i32_0 : i32, i32
  }
  func.func @transform_6(%arg0: i32) -> (i32, i32) {
    %c0_i32 = arith.constant 0 : i32
    %c0_i32_0 = arith.constant 0 : i32
    %c0_i32_1 = arith.constant 0 : i32
    return %c0_i32, %c0_i32_0 : i32, i32
  }
  func.func @transform_7(%arg0: i32) -> (i32, i32) {
    %c0_i32 = arith.constant 0 : i32
    %c0_i32_0 = arith.constant 0 : i32
    return %arg0, %c0_i32 : i32, i32
  }
}

</mosaic_0001>

<bundles_post_ra>
// kernel: tpu_custom_call.1
= control target key start
LH: loop header
LB: loop body
LE: loop exit
PB: predicated region body
PF: predicated region fallthrough
CT: control target
= control target key end

     0   :  { %12 = vsyncpa [#allocation3], 0  ;;  %s545_s0 = inlined_call_operand.hbm [shape: f32[8,16], index: 0, kind: input, shape index: {}]   ;;  %s546_s1 = inlined_call_operand.vmem [shape: f32[16,32], index: 1, kind: input, shape index: {}]   ;;  %s547_s2 = inlined_call_operand.vmem [shape: f32[1,32], index: 2, kind: input, shape index: {}]   ;;  %s548_s3 = inlined_call_operand.vmem [shape: f32[32,32], index: 3, kind: input, shape index: {}]   ;;  %s549_s4 = inlined_call_operand.vmem [shape: f32[1,32], index: 4, kind: input, shape index: {}]   ;;  %s550_s5 = inlined_call_operand.vmem [shape: f32[32,16], index: 5, kind: input, shape index: {}]   ;;  %s551_s6 = inlined_call_operand.vmem [shape: f32[1,16], index: 6, kind: input, shape index: {}]   ;;  %s552_s7 = inlined_call_operand.hbm [shape: f32[8,16], index: 7, kind: output, shape index: {}]  }
   0x1   :  { %13 = vsyncpa [#allocation4], 0  ;;  %s432_s24 = smov [#allocation2]   ;;  %s384_s28 = scalar_lea.hbm %s545_s0, 128 }
   0x2   :  { %s20_s25 = sshll.u32 %s432_s24, 4  ;;  %p385_p0 = scmp.ne.s32.totalorder %s545_s0, %s384_s28  ;;  %s21_s25 = int_to_ptr.vmem [resolvable:$true] %s20_s25 }
   0x3   :  { %p388_p1 = scmp.lt.u32.totalorder %s384_s28, %s545_s0 }
   0x5   :  { %p390_p2 = pnand %p388_p1, %p385_p0 }
   0x7   :  { %393 = shalt.err (!%p390_p2)
}
   0x8   :  { %s394_s10 = scalar_lea.vmem %s21_s25, 128  ;;  %p399_p4 = scmp.lt.s32.totalorder %s21_s25, %s21_s25 }
   0x9   :  { %p395_p3 = scmp.ne.s32.totalorder %s21_s25, %s394_s10  ;;  %p400_p5 = scmp.lt.s32.totalorder %s394_s10, %s394_s10 }
   0xb   :  { %p401_p6 = por %p400_p5, %p399_p4 }
   0xd   :  { %p402_p7 = pnand %p401_p6, %p395_p3 }
   0xf   :  { %405 = shalt.err (!%p402_p7)
}
  0x10   :  { %23 = dma.hbm_to_vmem [thread:$0]  %s545_s0, 128, %s21_s25, [#allocation3]  }
  0x11   :  { %428 = dma.done.wait [#allocation3], 128  }
  0x12   :  { %429 = vsyncadd [#allocation3], 4294967168  ;;  %v433_v0 = vmov 0.0|0.0   ;;  %vm434_vm0 = vmmov 0   ;;  %v435_v1 = vmov 0.0   ;;  %v40_v2 = vld [vmem:[%s546_s1] sm:$0xff]  ;;  %v294_v28 = vlaneseq }
  0x13   :  { %364 = vmatprep.subr.bf16.mxu0 %v433_v0  ;;  %339 = vmatprep.mubr.msk.f32.mxu0 %vm434_vm0, %v435_v1  ;;  %v41_v3 = vld [vmem:[%s546_s1 + $0x8] sm:$0xff]  ;;  %v124_v5 = vld [vmem:[%s548_s3] sm:$0xff]  ;;  %vm49_vm1 = vcmask 130048   ;;  %v126_v9 = vld [vmem:[%s548_s3 + $0x10] sm:$0xff]  ;;  %vm135_vm2 = vcmask 261120  }
  0x14   :  { %367 = vmatprep.subr.bf16.mxu1 %v433_v0  ;;  %350 = vmatprep.mubr.msk.f32.mxu1 %vm434_vm0, %v435_v1  ;;  %v365_v4 = vpack.c.bf16 %v41_v3, %v40_v2  ;;  %v125_v6 = vld [vmem:[%s548_s3 + $0x8] sm:$0xff]  ;;  %v39_v8 = vld [vmem:[#allocation2] sm:$0xff]  ;;  %v127_v10 = vld [vmem:[%s548_s3 + $0x18] sm:$0xff]  ;;  %v295_v31 = vand.u32 127, %v294_v28 }
  0x15   :  { %v368_v7 = vpack.c.bf16 %v125_v6, %v124_v5  ;;  %v371_v11 = vpack.c.bf16 %v127_v10, %v126_v9  ;;  %v210_v12 = vld [vmem:[%s550_s5] sm:$0xff]  ;;  %v211_v13 = vld [vmem:[%s550_s5 + $0x8] sm:$0xff]  ;;  %v212_v20 = vld [vmem:[%s550_s5 + $0x10] sm:$0xff] }
  0x16   :  { %366 = vmatpush3.bf16.msra.mxu0 %v365_v4  ;;  %v374_v14 = vpack.c.bf16 %v211_v13, %v210_v12  ;;  %v316_v15 = vld [vmem:[%s547_s2] ss:$0 sm:$0xff]  ;;  %v213_v21 = vld [vmem:[%s550_s5 + $0x18] sm:$0xff]  ;;  %s436_s5 = smov [#allocation5]   ;;  %vm298_vm3 = vcmp.ge.s32.totalorder %v295_v31, 8 }
  0x17   :  { %369 = vmatpush3.bf16.msra.mxu1 %v368_v7  ;;  %373 = vmatprep.subr.bf16.mxu0 %v433_v0  ;;  %v377_v22 = vpack.c.bf16 %v213_v21, %v212_v20  ;;  %v318_v23 = vld [vmem:[%s549_s4] ss:$0 sm:$0xff]  ;;  %s307_s12 = sshll.u32 %s436_s5, 4  ;;  %s308_s12 = int_to_ptr.vmem [resolvable:$true] %s307_s12 }
  0x18   :  { %370 = vmatprep.subr.bf16.mxu1 %v433_v0  ;;  %v320_v29 = vld [vmem:[%s551_s6] ss:$0 sm:$0xff]  ;;  %s406_s4 = scalar_lea.vmem %s308_s12, 128  ;;  %p411_p9 = scmp.lt.s32.totalorder %s308_s12, %s308_s12 }
  0x19   :  { %340 = vmatmul.mubr.msk.f32.vlgmr.msra.gmra.mrb[0].mxu0 %vm49_vm1, %v39_v8  ;;  %p407_p8 = scmp.ne.s32.totalorder %s308_s12, %s406_s4  ;;  %p412_p10 = scmp.lt.s32.totalorder %s406_s4, %s406_s4 }
  0x1a   :  { %361 = vmatprep.mubr.msk.f32.mxu0 %vm434_vm0, %v435_v1  ;;  %375 = vmatpush3.bf16.msra.mxu0 %v374_v14 }
  0x1b   :  { %372 = vmatpush3.bf16.msra.mxu1 %v371_v11  ;;  %376 = vmatprep.subr.bf16.mxu0 %v433_v0  ;;  %p413_p11 = por %p412_p10, %p411_p9 }
  0x1d   :  { %p414_p12 = pnand %p413_p11, %p407_p8 }
  0x1e   :  { %378 = vmatpush3.bf16.msra.mxu0 %v377_v22 }
  0xec   :  { %v119_v16 = vpop.f32.mrb[0].mxu0 }
  0xed   :  { %v120_v17 = vadd.f32 %v316_v15, %v119_v16  ;;  %v341_v18 = vpop.f32.mrb[1].mxu0 }
  0xef   :  { %v123_v19 = vmax.f32 %v120_v17, 0.0 }
  0xf1   :  { %351 = vmatmul.mubr.msk.f32.vlgmr.msra.gmra.mrb[0].mxu1 %vm135_vm2, %v123_v19 }
 0x1c4   :  { %v205_v24 = vpop.f32.mrb[0].mxu1 }
 0x1c5   :  { %v206_v25 = vadd.f32 %v318_v23, %v205_v24  ;;  %v352_v26 = vpop.f32.mrb[1].mxu1 }
 0x1c7   :  { %v209_v27 = vmax.f32 %v206_v25, 0.0 }
 0x1c9   :  { %362 = vmatmul.mubr.msk.f32.vlgmr.msra.gmra.mrb[2].mxu0 %vm135_vm2, %v209_v27 }
 0x29c   :  { %v290_v30 = vpop.f32.mrb[2].mxu0 }
 0x29d   :  { %v291_v32 = vadd.f32 %v320_v29, %v290_v30  ;;  %v363_v33 = vpop.f32.mrb[3].mxu0 }
 0x29f   :  { %v296_v34 = vmax.f32 %v291_v32, -20.0 }
 0x2a1   :  { %v297_v35 = vmin.f32 %v296_v34, 2.0 }
 0x2a3   :  { %v299_v36 = vsel %vm298_vm3, %v297_v35, %v291_v32 }
 0x2a4   :  { %300 = vst.msk [vmem:[#allocation5] sm:$0xff] %vm49_vm1, %v299_v36 }
 0x2a5   :  { %417 = shalt.err (!%p414_p12)
}
 0x2a6   :  { %s418_s14 = scalar_lea.hbm %s552_s7, 128 }
 0x2a7   :  { %p419_p13 = scmp.ne.s32.totalorder %s552_s7, %s418_s14  ;;  %p422_p0 = scmp.lt.u32.totalorder %s418_s14, %s552_s7 }
 0x2a9   :  { %p424_p1 = pnand %p422_p0, %p419_p13 }
 0x2ab   :  { %427 = shalt.err (!%p424_p1)
}
 0x2ac   :  { %310 = dma.vmem_to_hbm [thread:$0]  %s308_s12, 128, %s552_s7, [#allocation4]  }
 0x2ad   :  { %430 = dma.done.wait [#allocation4], 128  }
 0x2ae   :  { %431 = vsyncadd [#allocation4], 4294967168 }
 0x2af   :  { %314 = vsyncpa [#allocation3], 1 }
 0x2b0   :  { %315 = vsyncpa [#allocation4], 1 }

</bundles_post_ra>
